<compile_context>
chip_gen: v7x
topology: tpu7x:2x2x1
jax: 0.10.0
libtpu: 0.0.40
codegen_flags: <defaults>
</compile_context>

<pallas_src>
import functools

import jax
import jax.numpy as jnp
from jax.experimental import pallas as pl
from jax.experimental.pallas import tpu as pltpu


def _moving_avg_kernel(x_ref, o_ref, xpad_ref, *, kernel_size, stride, pad,
                       L, L_out, out_chunk):
    """x_ref: (L, T); o_ref: (L_out, T); xpad_ref: f32 scratch (L + 2*pad, T)."""
    T = x_ref.shape[-1]

    # ---- In-kernel edge-replication padding (one f32 cast per element). ----
    xpad_ref[pl.ds(pad, L), :] = x_ref[...].astype(jnp.float32)
    if pad > 0:
        first = x_ref[pl.ds(0, 1), :].astype(jnp.float32)
        last = x_ref[pl.ds(L - 1, 1), :].astype(jnp.float32)
        xpad_ref[pl.ds(0, pad), :] = jnp.broadcast_to(first, (pad, T))
        xpad_ref[pl.ds(L + pad, pad), :] = jnp.broadcast_to(last, (pad, T))

    inv_k = jnp.float32(1.0 / kernel_size)

    if stride == 1 and kernel_size <= 8:
        # ---- Small-K path: K unrolled VPU adds over dense sublane slices. ----
        acc = xpad_ref[pl.ds(0, L_out), :]
        for k in range(1, kernel_size):
            acc = acc + xpad_ref[pl.ds(k, L_out), :]
        o_ref[...] = (acc * inv_k).astype(o_ref.dtype)
    else:
        # ---- Large-K / strided path: banded 0/1 matmul on the MXU. ----------
        def band01(n_rows):
            win = (n_rows - 1) * stride + kernel_size
            t = jax.lax.broadcasted_iota(jnp.int32, (n_rows, win), 0)
            j = jax.lax.broadcasted_iota(jnp.int32, (n_rows, win), 1)
            start = t * stride
            keep = (j >= start) & (j < start + kernel_size)
            return jnp.where(keep, jnp.float32(1.0), jnp.float32(0.0))

        def emit(q0, n_rows, band):
            win = (n_rows - 1) * stride + kernel_size
            xw = xpad_ref[pl.ds(q0 * stride, win), :]
            s = jnp.dot(band, xw, preferred_element_type=jnp.float32)
            o_ref[pl.ds(q0, n_rows), :] = (s * inv_k).astype(o_ref.dtype)

        n_full = L_out // out_chunk
        rem = L_out - n_full * out_chunk
        if n_full > 0:
            band_full = band01(out_chunk)          # built once, reused
            for c in range(n_full):                # static unroll, small count
                emit(c * out_chunk, out_chunk, band_full)
        if rem > 0:
            emit(n_full * out_chunk, rem, band01(rem))


def _choose_lane_tile(BC, L, itemsize, budget_bytes=2 << 20):
    """Split the fused batch*channel (lane) axis only when it is 128-aligned
    and a single (L, BC) block would be large; otherwise keep one block."""
    if BC % 128 != 0:
        return BC
    tile = BC
    while tile > 128 and tile % 256 == 0 and L * tile * itemsize > budget_bytes:
        tile //= 2
    return tile


def moving_avg(x, kernel_size, stride, *, out_chunk=256):
    """x: (B, L, C) -> (B, L_out, C); matches the PyTorch module exactly."""
    B, L, C = x.shape
    pad = (kernel_size - 1) // 2
    L_pad = L + 2 * pad
    L_out = (L_pad - kernel_size) // stride + 1
    assert L_out >= 1, "sequence too short for this kernel_size/stride"

    BC = B * C
    # Lane-dense layout plumbing: time -> sublane axis, batch*channel -> lanes.
    x_t = jnp.transpose(x, (1, 0, 2)).reshape(L, BC)

    itemsize = jnp.dtype(x.dtype).itemsize
    lane_tile = _choose_lane_tile(BC, L, itemsize)
    n_lane = BC // lane_tile
    out_chunk = min(out_chunk, L_out)

    kernel = functools.partial(
        _moving_avg_kernel,
        kernel_size=kernel_size, stride=stride, pad=pad,
        L=L, L_out=L_out, out_chunk=out_chunk)

    # Explicit VMEM budget: double-buffered in/out blocks + f32 padded scratch
    # + band + result tile; clamped below v7x's 64 MiB physical VMEM.
    win = (out_chunk - 1) * stride + kernel_size
    est = (2 * L * lane_tile * itemsize
           + 2 * L_out * lane_tile * itemsize
           + L_pad * lane_tile * 4
           + out_chunk * win * 4
           + out_chunk * lane_tile * 4)
    vmem_limit = int(min(max(2 * est, 16 << 20), 48 << 20))

    out_t = pl.pallas_call(
        kernel,
        out_shape=jax.ShapeDtypeStruct((L_out, BC), x.dtype),
        grid=(n_lane,),
        in_specs=[pl.BlockSpec((L, lane_tile), lambda c: (0, c))],
        out_specs=pl.BlockSpec((L_out, lane_tile), lambda c: (0, c)),
        scratch_shapes=[pltpu.VMEM((L_pad, lane_tile), jnp.float32)],
        compiler_params=pltpu.CompilerParams(
            dimension_semantics=("parallel",),
            vmem_limit_bytes=vmem_limit,
        ),
    )(x_t)

    return jnp.transpose(out_t.reshape(L_out, B, C), (1, 0, 2))


def _reference(x, kernel_size, stride):
    """Pure-JAX reference reproducing the PyTorch forward."""
    pad = (kernel_size - 1) // 2
    front = jnp.repeat(x[:, 0:1, :], pad, axis=1)
    end = jnp.repeat(x[:, -1:, :], pad, axis=1)
    xp = jnp.concatenate([front, x, end], axis=1)
    L_pad = xp.shape[1]
    L_out = (L_pad - kernel_size) // stride + 1
    outs = []
    for t in range(L_out):
        outs.append(jnp.mean(xp[:, t * stride:t * stride + kernel_size, :], axis=1))
    return jnp.stack(outs, axis=1)


if __name__ == "__main__":
    key = jax.random.PRNGKey(0)

    # (B, L, C, kernel_size, stride): small-K tap path, Autoformer-style K=25
    # MXU path, and an even-K / stride>1 MXU path.
    configs = [
        (2, 16, 8, 5, 1),
        (2, 48, 8, 25, 1),
        (2, 32, 8, 4, 2),
    ]
    for i, (B, L, C, K, S) in enumerate(configs):
        k = jax.random.fold_in(key, i)
        if S == 1 and K <= 8:
            x = jax.random.normal(k, (B, L, C), dtype=jnp.float32)
        else:
            # Integer-valued inputs keep the MXU-path comparison exact
            # regardless of the hardware matmul precision mode.
            x = jax.random.randint(k, (B, L, C), -4, 5).astype(jnp.float32)

        out = jax.block_until_ready(moving_avg(x, K, S))
        ref = _reference(x, K, S)
        assert out.shape == ref.shape, (out.shape, ref.shape)
        assert jnp.allclose(out, ref, atol=1e-5, rtol=1e-5), (K, S)

    print("KERNEL_OK")
</pallas_src>

<mosaic_0001>
module attributes {stable_mosaic.version = 11 : i64} {
  func.func @_moving_avg_kernel(%arg0: i32, %arg1: memref<16x16xf32, #tpu.memory_space<vmem>>, %arg2: memref<16x16xf32, #tpu.memory_space<vmem>>, %arg3: memref<20x16xf32, #tpu.memory_space<vmem>>) attributes {dimension_semantics = [#tpu.dimension_semantics<parallel>], iteration_bounds = array<i64: 1>, scalar_prefetch = 0 : i64, scratch_operands = 1 : i64, tpu.core_type = #tpu.core_type<tc>, window_params = [{transform_indices = @transform_0, window_bounds = array<i64: 16, 16>}, {transform_indices = @transform_1, window_bounds = array<i64: 16, 16>}]} {
    %c0 = arith.constant 0 : index
    %c0_0 = arith.constant 0 : index
    %0 = vector.load %arg1[%c0, %c0_0] : memref<16x16xf32, #tpu.memory_space<vmem>>, vector<16x16xf32>
    %c2 = arith.constant 2 : index
    %c0_1 = arith.constant 0 : index
    %1 = vector.load %arg3[%c2, %c0_1] : memref<20x16xf32, #tpu.memory_space<vmem>>, vector<16x16xf32>
    tpu.vector_store %arg3[%c2, %c0_1], %0 {strides = array<i32>} : memref<20x16xf32, #tpu.memory_space<vmem>>, vector<16x16xf32>,
    %c0_2 = arith.constant 0 : index
    %c0_3 = arith.constant 0 : index
    %2 = vector.load %arg1[%c0_2, %c0_3] : memref<16x16xf32, #tpu.memory_space<vmem>>, vector<1x16xf32>
    %c15 = arith.constant 15 : index
    %c0_4 = arith.constant 0 : index
    %3 = vector.load %arg1[%c15, %c0_4] : memref<16x16xf32, #tpu.memory_space<vmem>>, vector<1x16xf32>
    %4 = vector.shape_cast %2 : vector<1x16xf32> to vector<1x16xf32>
    %5 = vector.broadcast %4 : vector<1x16xf32> to vector<2x16xf32>
    %c0_5 = arith.constant 0 : index
    %c0_6 = arith.constant 0 : index
    %6 = vector.load %arg3[%c0_5, %c0_6] : memref<20x16xf32, #tpu.memory_space<vmem>>, vector<2x16xf32>
    tpu.vector_store %arg3[%c0_5, %c0_6], %5 {strides = array<i32>} : memref<20x16xf32, #tpu.memory_space<vmem>>, vector<2x16xf32>,
    %7 = vector.shape_cast %3 : vector<1x16xf32> to vector<1x16xf32>
    %8 = vector.broadcast %7 : vector<1x16xf32> to vector<2x16xf32>
    %c18 = arith.constant 18 : index
    %c0_7 = arith.constant 0 : index
    %9 = vector.load %arg3[%c18, %c0_7] : memref<20x16xf32, #tpu.memory_space<vmem>>, vector<2x16xf32>
    tpu.vector_store %arg3[%c18, %c0_7], %8 {strides = array<i32>} : memref<20x16xf32, #tpu.memory_space<vmem>>, vector<2x16xf32>,
    %c0_8 = arith.constant 0 : index
    %c0_9 = arith.constant 0 : index
    %10 = vector.load %arg3[%c0_8, %c0_9] : memref<20x16xf32, #tpu.memory_space<vmem>>, vector<16x16xf32>
    %c1 = arith.constant 1 : index
    %c0_10 = arith.constant 0 : index
    %11 = vector.load %arg3[%c1, %c0_10] : memref<20x16xf32, #tpu.memory_space<vmem>>, vector<16x16xf32>
    %12 = arith.addf %10, %11 : vector<16x16xf32>
    %c2_11 = arith.constant 2 : index
    %c0_12 = arith.constant 0 : index
    %13 = vector.load %arg3[%c2_11, %c0_12] : memref<20x16xf32, #tpu.memory_space<vmem>>, vector<16x16xf32>
    %14 = arith.addf %12, %13 : vector<16x16xf32>
    %c3 = arith.constant 3 : index
    %c0_13 = arith.constant 0 : index
    %15 = vector.load %arg3[%c3, %c0_13] : memref<20x16xf32, #tpu.memory_space<vmem>>, vector<16x16xf32>
    %16 = arith.addf %14, %15 : vector<16x16xf32>
    %c4 = arith.constant 4 : index
    %c0_14 = arith.constant 0 : index
    %17 = vector.load %arg3[%c4, %c0_14] : memref<20x16xf32, #tpu.memory_space<vmem>>, vector<16x16xf32>
    %18 = arith.addf %16, %17 : vector<16x16xf32>
    %cst = arith.constant 2.000000e-01 : f32
    %19 = vector.broadcast %cst : f32 to vector<16x16xf32>
    %20 = arith.mulf %18, %19 : vector<16x16xf32>
    %c0_15 = arith.constant 0 : index
    %c0_16 = arith.constant 0 : index
    %21 = vector.load %arg2[%c0_15, %c0_16] : memref<16x16xf32, #tpu.memory_space<vmem>>, vector<16x16xf32>
    tpu.vector_store %arg2[%c0_15, %c0_16], %20 {strides = array<i32>} : memref<16x16xf32, #tpu.memory_space<vmem>>, vector<16x16xf32>,
    return
  }
  func.func @transform_0(%arg0: i32) -> (i32, i32) {
    %c0_i32 = arith.constant 0 : i32
    %c0_i32_0 = arith.constant 0 : i32
    return %c0_i32, %arg0 : i32, i32
  }
  func.func @transform_1(%arg0: i32) -> (i32, i32) {
    %c0_i32 = arith.constant 0 : i32
    %c0_i32_0 = arith.constant 0 : i32
    return %c0_i32, %arg0 : i32, i32
  }
}

</mosaic_0001>

<bundles_post_ra>
// kernel: tpu_custom_call.1
= control target key start
LH: loop header
LB: loop body
LE: loop exit
PB: predicated region body
PF: predicated region fallthrough
CT: control target
= control target key end

     0   :  { %6 = vsyncpa [#allocation4], 0  ;;  %s182_s0 = inlined_call_operand.hbm [shape: f32[16,16], index: 0, kind: input, shape index: {}]   ;;  %s183_s1 = inlined_call_operand.hbm [shape: f32[16,16], index: 1, kind: output, shape index: {}]  }
   0x1   :  { %7 = vsyncpa [#allocation5], 0  ;;  %s134_s6 = smov [#allocation3]   ;;  %s86_s10 = scalar_lea.hbm %s182_s0, 256 }
   0x2   :  { %s13_s7 = sshll.u32 %s134_s6, 4  ;;  %p87_p0 = scmp.ne.s32.totalorder %s182_s0, %s86_s10  ;;  %s14_s7 = int_to_ptr.vmem [resolvable:$true] %s13_s7 }
   0x3   :  { %p90_p1 = scmp.lt.u32.totalorder %s86_s10, %s182_s0 }
   0x5   :  { %p92_p2 = pnand %p90_p1, %p87_p0 }
   0x7   :  { %95 = shalt.err (!%p92_p2)
}
   0x8   :  { %s96_s15 = scalar_lea.vmem %s14_s7, 256  ;;  %p101_p4 = scmp.lt.s32.totalorder %s14_s7, %s14_s7 }
   0x9   :  { %p97_p3 = scmp.ne.s32.totalorder %s14_s7, %s96_s15  ;;  %p102_p5 = scmp.lt.s32.totalorder %s96_s15, %s96_s15 }
   0xb   :  { %p103_p6 = por %p102_p5, %p101_p4 }
   0xd   :  { %p104_p7 = pnand %p103_p6, %p97_p3 }
   0xf   :  { %107 = shalt.err (!%p104_p7)
}
  0x10   :  { %s135_s16 = smov 128   ;;  %s136_s17 = smov 8  }
  0x11   :  { %19 = dma.hbm_to_vmem [thread:$0]  %s182_s0, 256, %s14_s7, [#allocation4], %s135_s16, %s135_s16, %s136_s17  }
  0x12   :  { %130 = dma.done.wait [#allocation4], 256  }
  0x13   :  { %131 = vsyncadd [#allocation4], 4294967040  ;;  %vm25_vm0 = vcmask 130048   ;;  %vm34_vm1 = vcmask 123904   ;;  %v23_v0 = vld [vmem:[#allocation3] sm:$0xff]  ;;  %v24_v1 = vld [vmem:[#allocation3 + $0x8] sm:$0xff] }
  0x14   :  { %v80_v2 = vld [vmem:[#allocation3] ss:$0 sm:$0xff]  ;;  %26 = vst.msk [vmem:[#allocation2 + $0x2] sm:$0xff] %vm25_vm0, %v23_v0  ;;  %27 = vst.msk [vmem:[#allocation2 + $0xa] sm:$0xff] %vm25_vm0, %v24_v1  ;;  %v81_v3 = vld [vmem:[#allocation3 + $0xf] ss:$0 sm:$0xff] }
  0x15   :  { %35 = vst.msk [vmem:[#allocation2] sm:$0x3] %vm34_vm1, %v80_v2  ;;  %40 = vst.msk [vmem:[#allocation2 + $0x12] sm:$0x3] %vm34_vm1, %v81_v3  ;;  %s137_s0 = smov [#allocation6]  }
  0x16   :  { %s68_s20 = sshll.u32 %s137_s0, 4  ;;  %s69_s20 = int_to_ptr.vmem [resolvable:$true] %s68_s20 }
  0x17   :  { %s108_s21 = scalar_lea.vmem %s69_s20, 256  ;;  %p113_p9 = scmp.lt.s32.totalorder %s69_s20, %s69_s20 }
  0x18   :  { %p109_p8 = scmp.ne.s32.totalorder %s69_s20, %s108_s21  ;;  %p114_p10 = scmp.lt.s32.totalorder %s108_s21, %s108_s21 }
  0x1a   :  { %p115_p11 = por %p114_p10, %p113_p9 }
  0x1b   :  { %v42_v7 = vld [vmem:[#allocation2 + $0x8] sm:$0xff] }
  0x1c   :  { %v41_v4 = vld [vmem:[#allocation2] sm:$0xff]  ;;  %v44_v9 = vld [vmem:[#allocation2 + $0x9] sm:$0xff]  ;;  %p116_p12 = pnand %p115_p11, %p109_p8 }
  0x1d   :  { %v43_v5 = vld [vmem:[#allocation2 + $0x1] sm:$0xff]  ;;  %v46_v11 = vadd.f32 %v44_v9, %v42_v7  ;;  %v48_v13 = vld [vmem:[#allocation2 + $0xa] sm:$0xff] }
  0x1e   :  { %v45_v6 = vadd.f32 %v43_v5, %v41_v4  ;;  %v47_v8 = vld [vmem:[#allocation2 + $0x2] sm:$0xff]  ;;  %v52_v17 = vld [vmem:[#allocation2 + $0xb] sm:$0xff] }
  0x1f   :  { %v51_v12 = vld [vmem:[#allocation2 + $0x3] sm:$0xff]  ;;  %v50_v15 = vadd.f32 %v48_v13, %v46_v11  ;;  %v56_v20 = vld [vmem:[#allocation2 + $0xc] sm:$0xff] }
  0x20   :  { %v49_v10 = vadd.f32 %v47_v8, %v45_v6  ;;  %v55_v16 = vld [vmem:[#allocation2 + $0x4] sm:$0xff] }
  0x21   :  { %v54_v19 = vadd.f32 %v52_v17, %v50_v15 }
  0x22   :  { %v53_v14 = vadd.f32 %v51_v12, %v49_v10 }
  0x23   :  { %v58_v22 = vadd.f32 %v56_v20, %v54_v19 }
  0x24   :  { %v57_v18 = vadd.f32 %v55_v16, %v53_v14 }
  0x25   :  { %v60_v23 = vmul.f32 0.2, %v58_v22 }
  0x26   :  { %v59_v21 = vmul.f32 0.2, %v57_v18 }
  0x27   :  { %62 = vst.msk [vmem:[#allocation6 + $0x8] sm:$0xff] %vm25_vm0, %v60_v23 }
  0x28   :  { %61 = vst.msk [vmem:[#allocation6] sm:$0xff] %vm25_vm0, %v59_v21 }
  0x29   :  { %119 = shalt.err (!%p116_p12)
}
  0x2a   :  { %s120_s24 = scalar_lea.hbm %s183_s1, 256 }
  0x2b   :  { %p121_p13 = scmp.ne.s32.totalorder %s183_s1, %s120_s24  ;;  %p124_p0 = scmp.lt.u32.totalorder %s120_s24, %s183_s1 }
  0x2d   :  { %p126_p1 = pnand %p124_p0, %p121_p13 }
  0x2f   :  { %129 = shalt.err (!%p126_p1)
}
  0x30   :  { %74 = dma.vmem_to_hbm [thread:$0]  %s69_s20, 256, %s183_s1, [#allocation5], %s135_s16, %s135_s16, %s136_s17  }
  0x31   :  { %132 = dma.done.wait [#allocation5], 256  }
  0x32   :  { %133 = vsyncadd [#allocation5], 4294967040 }
  0x33   :  { %78 = vsyncpa [#allocation4], 1 }
  0x34   :  { %79 = vsyncpa [#allocation5], 1 }

</bundles_post_ra>
